<compile_context>
chip_gen: v5e
topology: v5e:2x2
jax: 0.10.0
libtpu: 0.0.40
codegen_flags: <defaults>
</compile_context>

<pallas_src>
import functools

import jax
import jax.numpy as jnp
from jax import lax
from jax.experimental import pallas as pl
from jax.experimental.pallas import tpu as pltpu

KERNEL_SIZES = (3, 15)
K_EFF = max(KERNEL_SIZES)      # folded effective depthwise kernel size (15)
PAD = (K_EFF - 1) // 2         # 'same' padding of the folded kernel (7)
LANE = 128                     # TPU lane width


def _fold_depthwise(gate, dw_weights):
    """Fold softmax(gate)-weighted depthwise kernels into one K_EFF-tap kernel (exact)."""
    c_out = dw_weights[0].shape[0]
    w_eff = jnp.zeros((c_out, K_EFF), jnp.float32)
    for i, w in enumerate(dw_weights):
        k = w.shape[1]
        off = PAD - (k - 1) // 2          # center the smaller kernel inside the 15 taps
        w_eff = w_eff.at[:, off:off + k].add(gate[i] * w.astype(jnp.float32))
    return w_eff


def _vmem_capacity_bytes():
    """Per-core VMEM capacity; conservative (v7x) fallback if the query is unavailable."""
    try:
        cap = getattr(pltpu.get_tpu_info(), "vmem_capacity_bytes", None)
        if cap:
            return int(cap)
    except Exception:
        pass
    return 64 << 20


def _default_tap_dtype():
    """bf16 tap math only where the VALU supports it (v6e/v7x); f32 elsewhere (v5e...)."""
    try:
        kind = jax.devices()[0].device_kind.lower()
    except Exception:
        return jnp.float32
    if "v6" in kind or "v7" in kind:
        return jnp.bfloat16
    return jnp.float32


def ddsc_kernel(x_ref, wpw_ref, wdw_ref, o_ref, *, apply_relu, tap_dtype):
    """One grid step processes Bt batch rows in channel-major flat layout.

    x_ref  : (C_in, Bt*Lp)      VMEM, matmul dtype (bf16 or f32); each Lp-row has >=7
                                zero tail columns.
    wpw_ref: (C_out, C_in)      VMEM, matmul dtype (pointwise conv weight)
    wdw_ref: (K_EFF, C_out, 1)  VMEM, f32 folded depthwise taps (softmax gate applied)
    o_ref  : (C_out, Bt*Lp)     VMEM
    """
    n = x_ref.shape[1]

    # One MXU matmul for the whole block: pointwise 1x1 conv over Bt rows at once.
    pw = jnp.dot(wpw_ref[...], x_ref[...],
                 preferred_element_type=jnp.float32)          # (C_out, Bt*Lp) f32
    if apply_relu:
        pw = jnp.maximum(pw, 0.0)
    pw = pw.astype(tap_dtype)

    w_taps = wdw_ref[...].astype(tap_dtype)                   # (K_EFF, C_out, 1)

    # Depthwise 'same' conv with the single folded 15-tap kernel, mask-free:
    # tap j contributes w[j] * pw[:, i + j - PAD] as a circular lane roll (XLU slot,
    # overlaps with the VPU FMAs). Because every Lp-row ends in >=7 zero columns,
    # a left-reading roll's wrapped lanes read those zeros (== zero padding) and a
    # right-reading roll's wrapped garbage only lands in output columns >= L that
    # the wrapper slices off.
    acc = w_taps[PAD] * pw                                    # center tap: no roll
    for j in range(K_EFF):
        if j == PAD:
            continue
        s = PAD - j                                           # static shift
        acc = acc + w_taps[j] * pltpu.roll(pw, shift=s % n, axis=1)

    o_ref[...] = acc.astype(o_ref.dtype)                      # single lane-dense store


def dynamic_depth_separable_conv1d(x, w_pointwise, w_dw3, w_dw15, dynamic_gate,
                                   *, intermediate_nonlinearity=False,
                                   use_bf16_matmul=True,
                                   tap_dtype=None,
                                   block_vmem_budget_bytes=None):
    """x: (B, C_in, L). Weights as produced by make_params(). Returns (B, C_out, L)."""
    orig_dtype = x.dtype
    B, C_in, L = x.shape
    C_out = w_pointwise.shape[0]

    # Fold softmax(gate) + both depthwise kernels into one 15-tap kernel (exact),
    # passed tap-leading as (K_EFF, C_out, 1) so each tap read is already (C_out, 1).
    gate = jax.nn.softmax(dynamic_gate.astype(jnp.float32), axis=-1)
    w_eff = _fold_depthwise(gate, (w_dw3, w_dw15))            # (C_out, 15)
    w_eff_taps = jnp.transpose(w_eff, (1, 0))[:, :, None]     # (15, C_out, 1) f32

    # Lane-dense padding with >= PAD zero tail columns per row -> mask-free depthwise.
    Lp = pl.cdiv(L + PAD, LANE) * LANE
    assert Lp - L >= PAD

    mm_dtype = jnp.bfloat16 if use_bf16_matmul else orig_dtype
    if tap_dtype is None:
        tap_dtype = _default_tap_dtype()

    vmem_cap = _vmem_capacity_bytes()
    if block_vmem_budget_bytes is None:
        # ~cap/5: ~12.8 MiB on v7x (64 MiB VMEM), ~25.6 MiB on v5e/v6e (128 MiB).
        block_vmem_budget_bytes = int(min(max(vmem_cap // 5, 8 << 20), 32 << 20))

    mm_sz = jnp.dtype(mm_dtype).itemsize
    out_sz = jnp.dtype(orig_dtype).itemsize

    # Rows per grid step from the byte budget: double-buffered in/out blocks plus
    # the f32/tap-dtype pw / acc / rolled temporaries.
    per_row = (2 * C_in * Lp * mm_sz + 2 * C_out * Lp * out_sz + 4 * C_out * Lp * 4)
    rows_by_mem = max(1, block_vmem_budget_bytes // per_row)
    bt_cap = max(1, B // 2)            # guarantee >=2 grid steps when B >= 2 (v7x: 2 TCs)
    Bt = int(max(1, min(rows_by_mem, bt_cap)))
    n_steps = int(pl.cdiv(B, Bt))
    Bpad = n_steps * Bt                # pad B with zero rows instead of shrinking Bt

    # Channel-major flat layout: row r occupies columns [r*Lp, (r+1)*Lp); its last
    # Lp-L >= 7 columns are zero, so rolls never leak non-zero data across rows.
    xp = jnp.pad(x.astype(mm_dtype), ((0, Bpad - B), (0, 0), (0, Lp - L)))
    x_cm = jnp.transpose(xp, (1, 0, 2)).reshape(C_in, Bpad * Lp)
    w_pw_in = w_pointwise.astype(mm_dtype)

    in_blk = C_in * Bt * Lp * mm_sz
    out_blk = C_out * Bt * Lp * out_sz
    temps = 4 * C_out * Bt * Lp * 4
    need = 2 * (in_blk + out_blk) + temps + (4 << 20)
    vmem_limit = int(min(vmem_cap * 3 // 4, max(need, 16 << 20)))

    kernel = functools.partial(ddsc_kernel,
                               apply_relu=intermediate_nonlinearity,
                               tap_dtype=tap_dtype)

    out_cm = pl.pallas_call(
        kernel,
        out_shape=jax.ShapeDtypeStruct((C_out, Bpad * Lp), orig_dtype),
        grid=(n_steps,),
        in_specs=[
            pl.BlockSpec((C_in, Bt * Lp), lambda i: (0, i)),          # x (channel-major)
            pl.BlockSpec((C_out, C_in), lambda i: (0, 0)),            # pointwise W
            pl.BlockSpec((K_EFF, C_out, 1), lambda i: (0, 0, 0)),     # folded dw taps
        ],
        out_specs=pl.BlockSpec((C_out, Bt * Lp), lambda i: (0, i)),
        compiler_params=pltpu.CompilerParams(
            dimension_semantics=("parallel",),
            vmem_limit_bytes=vmem_limit),
    )(x_cm, w_pw_in, w_eff_taps)

    # (C_out, Bpad*Lp) -> (B, C_out, L). Reshape is free; slice+transpose fuse into one
    # copy. Consumers that can take channel-major output may skip this step entirely.
    out = jnp.transpose(out_cm.reshape(C_out, Bpad, Lp)[:, :B, :L], (1, 0, 2))
    return out


def make_params(key, in_channels, out_channels):
    """Deterministic synthetic parameters matching the PyTorch module shapes."""
    k1, k2, k3 = jax.random.split(key, 3)
    # nn.Conv1d(in, out, 1).weight -> (out, in, 1); kernel dim squeezed
    w_pw = jax.random.normal(k1, (out_channels, in_channels), jnp.float32) * 0.1
    # depthwise nn.Conv1d(out, out, k, groups=out).weight -> (out, 1, k); squeezed
    w_dw3 = jax.random.normal(k2, (out_channels, KERNEL_SIZES[0]), jnp.float32) * 0.1
    w_dw15 = jax.random.normal(k3, (out_channels, KERNEL_SIZES[1]), jnp.float32) * 0.1
    # dynamic_gate initialized to 1/num_kernels each (as in the module __init__)
    gate = jnp.full((len(KERNEL_SIZES),), 1.0 / len(KERNEL_SIZES), jnp.float32)
    return w_pw, w_dw3, w_dw15, gate


def reference(x, w_pw, w_dw3, w_dw15, gate):
    """Pure-JAX full-f32 reference matching the PyTorch forward."""
    xf = x.astype(jnp.float32)
    pw = jnp.einsum("oc,bcl->bol", w_pw.astype(jnp.float32), xf,
                    precision=lax.Precision.HIGHEST)
    outs = []
    for w, k in ((w_dw3, KERNEL_SIZES[0]), (w_dw15, KERNEL_SIZES[1])):
        pad = (k - 1) // 2
        o = lax.conv_general_dilated(
            pw, w[:, None, :].astype(jnp.float32),
            window_strides=(1,), padding=[(pad, pad)],
            dimension_numbers=("NCH", "OIH", "NCH"),
            feature_group_count=w.shape[0],
            precision=lax.Precision.HIGHEST)
        outs.append(o)
    g = jax.nn.softmax(gate.astype(jnp.float32), axis=-1)
    return (g[0] * outs[0] + g[1] * outs[1]).astype(x.dtype)


if __name__ == "__main__":
    key = jax.random.PRNGKey(0)
    kx, kp = jax.random.split(key)

    B, C_in, C_out, L = 2, 4, 8, 16
    x = jax.random.normal(kx, (B, C_in, L), jnp.float32)
    w_pw, w_dw3, w_dw15, gate = make_params(kp, C_in, C_out)

    ref = reference(x, w_pw, w_dw3, w_dw15, gate)

    # Strict check: all-f32 kernel path vs full-f32 reference.
    out_f32 = dynamic_depth_separable_conv1d(
        x, w_pw, w_dw3, w_dw15, gate,
        use_bf16_matmul=False, tap_dtype=jnp.float32)
    out_f32 = jax.block_until_ready(out_f32)
    assert out_f32.shape == (B, C_out, L)
    assert jnp.allclose(out_f32, ref, atol=2e-3, rtol=2e-3), "f32 mismatch vs reference"

    # Default fast path: bf16 MXU inputs, bf16 tap math where supported (v6e/v7x).
    out = dynamic_depth_separable_conv1d(x, w_pw, w_dw3, w_dw15, gate)
    out = jax.block_until_ready(out)
    assert out.shape == (B, C_out, L)
    assert jnp.allclose(out, ref, atol=2e-2, rtol=5e-2), "mixed-precision mismatch vs f32 reference"

    print("KERNEL_OK")
</pallas_src>

<mosaic_0001>
module attributes {stable_mosaic.version = 11 : i64} {
  func.func @ddsc_kernel(%arg0: i32, %arg1: memref<4x128xf32, #tpu.memory_space<vmem>>, %arg2: memref<8x4xf32, #tpu.memory_space<vmem>>, %arg3: memref<15x8x1xf32, #tpu.memory_space<vmem>>, %arg4: memref<8x128xf32, #tpu.memory_space<vmem>>) attributes {dimension_semantics = [#tpu.dimension_semantics<parallel>], iteration_bounds = array<i64: 2>, scalar_prefetch = 0 : i64, scratch_operands = 0 : i64, tpu.core_type = #tpu.core_type<tc>, window_params = [{transform_indices = @transform_0, window_bounds = array<i64: 4, 128>}, {pipeline_mode = #tpu.pipeline_mode<synchronous>, transform_indices = @transform_1, window_bounds = array<i64: 8, 4>}, {pipeline_mode = #tpu.pipeline_mode<synchronous>, transform_indices = @transform_2, window_bounds = array<i64: 15, 8, 1>}, {transform_indices = @transform_3, window_bounds = array<i64: 8, 128>}]} {
    %c0 = arith.constant 0 : index
    %c0_0 = arith.constant 0 : index
    %0 = vector.load %arg2[%c0, %c0_0] : memref<8x4xf32, #tpu.memory_space<vmem>>, vector<8x4xf32>
    %c0_1 = arith.constant 0 : index
    %c0_2 = arith.constant 0 : index
    %1 = vector.load %arg1[%c0_1, %c0_2] : memref<4x128xf32, #tpu.memory_space<vmem>>, vector<4x128xf32>
    %cst = arith.constant dense<0.000000e+00> : vector<8x128xf32>
    %2 = tpu.matmul %0, %1, %cst {dimension_numbers = #tpu.dot_dimension_numbers<[1], [0], [0], [1], [0, 0, 1, 1], [], []>} : vector<8x4xf32>, vector<4x128xf32>, vector<8x128xf32> -> vector<8x128xf32>
    %c0_3 = arith.constant 0 : index
    %c0_4 = arith.constant 0 : index
    %c0_5 = arith.constant 0 : index
    %3 = vector.load %arg3[%c0_3, %c0_4, %c0_5] : memref<15x8x1xf32, #tpu.memory_space<vmem>>, vector<15x8x1xf32>
    %4 = vector.extract_strided_slice %3 {offsets = [7, 0, 0], sizes = [1, 8, 1], strides = [1, 1, 1]} : vector<15x8x1xf32> to vector<1x8x1xf32>
    %5 = vector.shape_cast %4 : vector<1x8x1xf32> to vector<8x1xf32>
    %6 = vector.broadcast %5 : vector<8x1xf32> to vector<8x128xf32>
    %7 = arith.mulf %6, %2 : vector<8x128xf32>
    %8 = vector.extract_strided_slice %3 {offsets = [0, 0, 0], sizes = [1, 8, 1], strides = [1, 1, 1]} : vector<15x8x1xf32> to vector<1x8x1xf32>
    %9 = vector.shape_cast %8 : vector<1x8x1xf32> to vector<8x1xf32>
    %c7_i32 = arith.constant 7 : i32
    %10 = tpu.dynamic_rotate %2 by %c7_i32 dim 1 : vector<8x128xf32>, i32 -> vector<8x128xf32>
    %11 = vector.broadcast %9 : vector<8x1xf32> to vector<8x128xf32>
    %12 = arith.mulf %11, %10 : vector<8x128xf32>
    %13 = arith.addf %7, %12 : vector<8x128xf32>
    %14 = vector.extract_strided_slice %3 {offsets = [1, 0, 0], sizes = [1, 8, 1], strides = [1, 1, 1]} : vector<15x8x1xf32> to vector<1x8x1xf32>
    %15 = vector.shape_cast %14 : vector<1x8x1xf32> to vector<8x1xf32>
    %c6_i32 = arith.constant 6 : i32
    %16 = tpu.dynamic_rotate %2 by %c6_i32 dim 1 : vector<8x128xf32>, i32 -> vector<8x128xf32>
    %17 = vector.broadcast %15 : vector<8x1xf32> to vector<8x128xf32>
    %18 = arith.mulf %17, %16 : vector<8x128xf32>
    %19 = arith.addf %13, %18 : vector<8x128xf32>
    %20 = vector.extract_strided_slice %3 {offsets = [2, 0, 0], sizes = [1, 8, 1], strides = [1, 1, 1]} : vector<15x8x1xf32> to vector<1x8x1xf32>
    %21 = vector.shape_cast %20 : vector<1x8x1xf32> to vector<8x1xf32>
    %c5_i32 = arith.constant 5 : i32
    %22 = tpu.dynamic_rotate %2 by %c5_i32 dim 1 : vector<8x128xf32>, i32 -> vector<8x128xf32>
    %23 = vector.broadcast %21 : vector<8x1xf32> to vector<8x128xf32>
    %24 = arith.mulf %23, %22 : vector<8x128xf32>
    %25 = arith.addf %19, %24 : vector<8x128xf32>
    %26 = vector.extract_strided_slice %3 {offsets = [3, 0, 0], sizes = [1, 8, 1], strides = [1, 1, 1]} : vector<15x8x1xf32> to vector<1x8x1xf32>
    %27 = vector.shape_cast %26 : vector<1x8x1xf32> to vector<8x1xf32>
    %c4_i32 = arith.constant 4 : i32
    %28 = tpu.dynamic_rotate %2 by %c4_i32 dim 1 : vector<8x128xf32>, i32 -> vector<8x128xf32>
    %29 = vector.broadcast %27 : vector<8x1xf32> to vector<8x128xf32>
    %30 = arith.mulf %29, %28 : vector<8x128xf32>
    %31 = arith.addf %25, %30 : vector<8x128xf32>
    %32 = vector.extract_strided_slice %3 {offsets = [4, 0, 0], sizes = [1, 8, 1], strides = [1, 1, 1]} : vector<15x8x1xf32> to vector<1x8x1xf32>
    %33 = vector.shape_cast %32 : vector<1x8x1xf32> to vector<8x1xf32>
    %c3_i32 = arith.constant 3 : i32
    %34 = tpu.dynamic_rotate %2 by %c3_i32 dim 1 : vector<8x128xf32>, i32 -> vector<8x128xf32>
    %35 = vector.broadcast %33 : vector<8x1xf32> to vector<8x128xf32>
    %36 = arith.mulf %35, %34 : vector<8x128xf32>
    %37 = arith.addf %31, %36 : vector<8x128xf32>
    %38 = vector.extract_strided_slice %3 {offsets = [5, 0, 0], sizes = [1, 8, 1], strides = [1, 1, 1]} : vector<15x8x1xf32> to vector<1x8x1xf32>
    %39 = vector.shape_cast %38 : vector<1x8x1xf32> to vector<8x1xf32>
    %c2_i32 = arith.constant 2 : i32
    %40 = tpu.dynamic_rotate %2 by %c2_i32 dim 1 : vector<8x128xf32>, i32 -> vector<8x128xf32>
    %41 = vector.broadcast %39 : vector<8x1xf32> to vector<8x128xf32>
    %42 = arith.mulf %41, %40 : vector<8x128xf32>
    %43 = arith.addf %37, %42 : vector<8x128xf32>
    %44 = vector.extract_strided_slice %3 {offsets = [6, 0, 0], sizes = [1, 8, 1], strides = [1, 1, 1]} : vector<15x8x1xf32> to vector<1x8x1xf32>
    %45 = vector.shape_cast %44 : vector<1x8x1xf32> to vector<8x1xf32>
    %c1_i32 = arith.constant 1 : i32
    %46 = tpu.dynamic_rotate %2 by %c1_i32 dim 1 : vector<8x128xf32>, i32 -> vector<8x128xf32>
    %47 = vector.broadcast %45 : vector<8x1xf32> to vector<8x128xf32>
    %48 = arith.mulf %47, %46 : vector<8x128xf32>
    %49 = arith.addf %43, %48 : vector<8x128xf32>
    %50 = vector.extract_strided_slice %3 {offsets = [8, 0, 0], sizes = [1, 8, 1], strides = [1, 1, 1]} : vector<15x8x1xf32> to vector<1x8x1xf32>
    %51 = vector.shape_cast %50 : vector<1x8x1xf32> to vector<8x1xf32>
    %c127_i32 = arith.constant 127 : i32
    %52 = tpu.dynamic_rotate %2 by %c127_i32 dim 1 : vector<8x128xf32>, i32 -> vector<8x128xf32>
    %53 = vector.broadcast %51 : vector<8x1xf32> to vector<8x128xf32>
    %54 = arith.mulf %53, %52 : vector<8x128xf32>
    %55 = arith.addf %49, %54 : vector<8x128xf32>
    %56 = vector.extract_strided_slice %3 {offsets = [9, 0, 0], sizes = [1, 8, 1], strides = [1, 1, 1]} : vector<15x8x1xf32> to vector<1x8x1xf32>
    %57 = vector.shape_cast %56 : vector<1x8x1xf32> to vector<8x1xf32>
    %c126_i32 = arith.constant 126 : i32
    %58 = tpu.dynamic_rotate %2 by %c126_i32 dim 1 : vector<8x128xf32>, i32 -> vector<8x128xf32>
    %59 = vector.broadcast %57 : vector<8x1xf32> to vector<8x128xf32>
    %60 = arith.mulf %59, %58 : vector<8x128xf32>
    %61 = arith.addf %55, %60 : vector<8x128xf32>
    %62 = vector.extract_strided_slice %3 {offsets = [10, 0, 0], sizes = [1, 8, 1], strides = [1, 1, 1]} : vector<15x8x1xf32> to vector<1x8x1xf32>
    %63 = vector.shape_cast %62 : vector<1x8x1xf32> to vector<8x1xf32>
    %c125_i32 = arith.constant 125 : i32
    %64 = tpu.dynamic_rotate %2 by %c125_i32 dim 1 : vector<8x128xf32>, i32 -> vector<8x128xf32>
    %65 = vector.broadcast %63 : vector<8x1xf32> to vector<8x128xf32>
    %66 = arith.mulf %65, %64 : vector<8x128xf32>
    %67 = arith.addf %61, %66 : vector<8x128xf32>
    %68 = vector.extract_strided_slice %3 {offsets = [11, 0, 0], sizes = [1, 8, 1], strides = [1, 1, 1]} : vector<15x8x1xf32> to vector<1x8x1xf32>
    %69 = vector.shape_cast %68 : vector<1x8x1xf32> to vector<8x1xf32>
    %c124_i32 = arith.constant 124 : i32
    %70 = tpu.dynamic_rotate %2 by %c124_i32 dim 1 : vector<8x128xf32>, i32 -> vector<8x128xf32>
    %71 = vector.broadcast %69 : vector<8x1xf32> to vector<8x128xf32>
    %72 = arith.mulf %71, %70 : vector<8x128xf32>
    %73 = arith.addf %67, %72 : vector<8x128xf32>
    %74 = vector.extract_strided_slice %3 {offsets = [12, 0, 0], sizes = [1, 8, 1], strides = [1, 1, 1]} : vector<15x8x1xf32> to vector<1x8x1xf32>
    %75 = vector.shape_cast %74 : vector<1x8x1xf32> to vector<8x1xf32>
    %c123_i32 = arith.constant 123 : i32
    %76 = tpu.dynamic_rotate %2 by %c123_i32 dim 1 : vector<8x128xf32>, i32 -> vector<8x128xf32>
    %77 = vector.broadcast %75 : vector<8x1xf32> to vector<8x128xf32>
    %78 = arith.mulf %77, %76 : vector<8x128xf32>
    %79 = arith.addf %73, %78 : vector<8x128xf32>
    %80 = vector.extract_strided_slice %3 {offsets = [13, 0, 0], sizes = [1, 8, 1], strides = [1, 1, 1]} : vector<15x8x1xf32> to vector<1x8x1xf32>
    %81 = vector.shape_cast %80 : vector<1x8x1xf32> to vector<8x1xf32>
    %c122_i32 = arith.constant 122 : i32
    %82 = tpu.dynamic_rotate %2 by %c122_i32 dim 1 : vector<8x128xf32>, i32 -> vector<8x128xf32>
    %83 = vector.broadcast %81 : vector<8x1xf32> to vector<8x128xf32>
    %84 = arith.mulf %83, %82 : vector<8x128xf32>
    %85 = arith.addf %79, %84 : vector<8x128xf32>
    %86 = vector.extract_strided_slice %3 {offsets = [14, 0, 0], sizes = [1, 8, 1], strides = [1, 1, 1]} : vector<15x8x1xf32> to vector<1x8x1xf32>
    %87 = vector.shape_cast %86 : vector<1x8x1xf32> to vector<8x1xf32>
    %c121_i32 = arith.constant 121 : i32
    %88 = tpu.dynamic_rotate %2 by %c121_i32 dim 1 : vector<8x128xf32>, i32 -> vector<8x128xf32>
    %89 = vector.broadcast %87 : vector<8x1xf32> to vector<8x128xf32>
    %90 = arith.mulf %89, %88 : vector<8x128xf32>
    %91 = arith.addf %85, %90 : vector<8x128xf32>
    %c0_6 = arith.constant 0 : index
    %c0_7 = arith.constant 0 : index
    %92 = vector.load %arg4[%c0_6, %c0_7] : memref<8x128xf32, #tpu.memory_space<vmem>>, vector<8x128xf32>
    tpu.vector_store %arg4[%c0_6, %c0_7], %91 {strides = array<i32>} : memref<8x128xf32, #tpu.memory_space<vmem>>, vector<8x128xf32>,
    return
  }
  func.func @transform_0(%arg0: i32) -> (i32, i32) {
    %c0_i32 = arith.constant 0 : i32
    %c0_i32_0 = arith.constant 0 : i32
    return %c0_i32, %arg0 : i32, i32
  }
  func.func @transform_1(%arg0: i32) -> (i32, i32) {
    %c0_i32 = arith.constant 0 : i32
    %c0_i32_0 = arith.constant 0 : i32
    %c0_i32_1 = arith.constant 0 : i32
    return %c0_i32, %c0_i32_0 : i32, i32
  }
  func.func @transform_2(%arg0: i32) -> (i32, i32, i32) {
    %c0_i32 = arith.constant 0 : i32
    %c0_i32_0 = arith.constant 0 : i32
    %c0_i32_1 = arith.constant 0 : i32
    %c0_i32_2 = arith.constant 0 : i32
    return %c0_i32, %c0_i32_0, %c0_i32_1 : i32, i32, i32
  }
  func.func @transform_3(%arg0: i32) -> (i32, i32) {
    %c0_i32 = arith.constant 0 : i32
    %c0_i32_0 = arith.constant 0 : i32
    return %c0_i32, %arg0 : i32, i32
  }
}

</mosaic_0001>

<bundles_post_ra>
// kernel: tpu_custom_call.1
= control target key start
LH: loop header
LB: loop body
LE: loop exit
PB: predicated region body
PF: predicated region fallthrough
CT: control target
= control target key end

     0   :  { %8 = vsyncpa [#allocation3], 0  ;;  %s720_s0 = inlined_call_operand.vmem [shape: f32[4,256], index: 0, kind: input, shape index: {}]   ;;  %s721_s1 = inlined_call_operand.vmem [shape: f32[8,4], index: 1, kind: input, shape index: {}]   ;;  %s722_s2 = inlined_call_operand.vmem [shape: f32[15,8,1], index: 2, kind: input, shape index: {}]   ;;  %s723_s3 = inlined_call_operand.hbm [shape: f32[8,256], index: 3, kind: output, shape index: {}]  }
   0x1   :  { %10 = vsyncpa [#allocation3 + $0x1], 0  ;;  %s587_s12 = smov 0   ;;  %s589_s13 = smov 0  }
   0x2   :  { %s591_s14 = smov 0   ;;  %s593_s15 = smov 0  }
   0x3 LB: > { %s608_s16 = sadd.s32 4294967295, %s550_s15   ;;  %s419_s17 = sadd.s32 4294967294, %s550_s15   ;;  %s550_s15 = sphi %s593_s15, %s729_s15   ;;  %s546_s14 = sphi %s591_s14, %s728_s14   ;;  %s542_s13 = sphi %s589_s13, %s727_s13   ;;  %s538_s12 = sphi %s587_s12, %s726_s12  }
   0x4   : > { %s612_s18 = sadd.s32 1, %s550_s15   ;;  %s91_s19 = sadd.s32 1, %s546_s14 }
   0x5   : > { %s88_s20 = ssub.s32 %s550_s15, %s612_s18  ;;  %p101_p0 = scmp.ne.s32.totalorder %s546_s14, %s542_s13 }
   0x6   : > { %p89_p1 = scmp.eq.s32.totalorder %s88_s20, 0  ;;  %p102_p2 = scmp.eq.s32.totalorder %s608_s16, 1 }
   0x7   : > { %p107_p3 = scmp.ne.s32.totalorder %s542_s13, %s538_s12  ;;  %p108_p4 = scmp.eq.s32.totalorder %s419_s17, 1 }
   0x8   : > { %s623_s21 = scalar_select %p89_p1, %s546_s14, %s91_s19  }
   0x9   : > { %p625_p5 = por %p102_p2, %p101_p0  ;;  %p629_p6 = por %p108_p4, %p107_p3 }
   0xa   : > { %p422_p7 = scmp.ge.s32.totalorder %s550_s15, 1  ;;  %p139_p8 = scmp.lt.s32.totalorder %s550_s15, 3 }
   0xc   : > { %p140_p9 = pnand %p422_p7, %p139_p8 }
   0xd   : > { %p162_p10 = scmp.lt.s32.totalorder (!%p140_p9), %s608_s16, 1  ;;  %s553_s17 = smov (!%p140_p9), 5  }
   0xe   : > { %143 = sbr.rel (%p140_p9) target bundleno = 313 (0x139), region = 32  ;;  %s554_s19 = smov (!%p140_p9), 6  }
   0xf   : > { %s555_s20 = smov (!%p140_p9), 7   ;;  %s556_s24 = smov (!%p140_p9), 2  }
  0x10   : > { %s557_s25 = smov (!%p140_p9), 4   ;;  %s558_s26 = smov (!%p140_p9), 3  }
  0x11   : > { %s559_s27 = smov (!%p140_p9), 126   ;;  %s561_s29 = smov (!%p140_p9), 127  }
  0x12   : > { %s562_s30 = smov (!%p140_p9), 123   ;;  %s564_s5 = smov (!%p140_p9), 124  }
  0x13   : > { %v203_v0 = vld [vmem:[%s722_s2 + $0x38] sm:$0xff]  ;;  %v552_v1 = vmov 0   ;;  %v196_v2 = vld [vmem:[%s722_s2] sm:$0xff]  ;;  %s163_s28 = scalar_select %p162_p10, %s608_s16, 1  ;;  %v197_v3 = vld [vmem:[%s722_s2 + $0x8] sm:$0xff]  ;;  %vm172_vm0 = vcmask 1043456  }
  0x14   : > { %485 = vset.pattern.permute.xlu0 %v552_v1  ;;  %486 = vset.pattern.permute.xlu1 %v552_v1  ;;  %v166_v4 = vld [vmem:[%s721_s1] sm:$0xff]  ;;  %vm168_vm1 = vcmask 31744   ;;  %v198_v6 = vld [vmem:[%s722_s2 + $0x10] sm:$0xff]  ;;  %v199_v8 = vld [vmem:[%s722_s2 + $0x18] sm:$0xff]  ;;  %s565_s8 = smov 122   ;;  %s566_s9 = smov 121  }
  0x15   : > { %213 = vperm.xlu0 %485, %v203_v0   ;;  %221 = vperm.xlu1 %486, %v196_v2   ;;  %s424_s4 = sshll.u32 %s163_s28, 2  ;;  %v200_v7 = vld [vmem:[%s722_s2 + $0x20] sm:$0xff]  ;;  %v201_v9 = vld [vmem:[%s722_s2 + $0x28] sm:$0xff]  ;;  %v202_v11 = vld [vmem:[%s722_s2 + $0x30] sm:$0xff]  ;;  %s560_s28 = smov 1  }
  0x16   : > { %487 = vset.pattern.permute.xlu2 %v552_v1  ;;  %s165_s7 = scalar_lea.vmem %s720_s0, %s424_s4  ;;  %v204_v10 = vld [vmem:[%s722_s2 + $0x40] sm:$0xff]  ;;  %v205_v12 = vld [vmem:[%s722_s2 + $0x48] sm:$0xff]  ;;  %v207_v13 = vld [vmem:[%s722_s2 + $0x58] sm:$0xff]  ;;  %s563_s4 = smov 125  }
  0x17   : > { %230 = vperm.xlu2 %487, %v197_v3   ;;  %v167_v5 = vld [vmem:[%s165_s7] sm:$0xf]  ;;  %v206_v14 = vld [vmem:[%s722_s2 + $0x50] sm:$0xff]  ;;  %v209_v17 = vld [vmem:[%s722_s2 + $0x68] sm:$0xff]  ;;  %s508_s7 = scalar_lea.hbm %s723_s3, 16 }
  0x18   : > { %425 = vmatpush.msk.msra.mxu0 %vm172_vm0, %v167_v5  ;;  %v208_v15 = vld [vmem:[%s722_s2 + $0x60] sm:$0xff]  ;;  %v210_v18 = vld [vmem:[%s722_s2 + $0x70] sm:$0xff] }
  0x19   : > { %426 = vmatmul.msk.f32.vlgmr.msra.gmra.mxu0 %vm168_vm1, %v166_v4 }
  0x1d   : > { %239 = vperm.xlu0 %485, %v198_v6   ;;  %257 = vperm.xlu1 %486, %v200_v7  }
  0x1f   : > { %248 = vperm.xlu2 %487, %v199_v8  }
  0x25   : > { %266 = vperm.xlu0 %485, %v201_v9   ;;  %284 = vperm.xlu1 %486, %v204_v10  }
  0x27   : > { %275 = vperm.xlu2 %487, %v202_v11  }
  0x2d   : > { %293 = vperm.xlu0 %485, %v205_v12   ;;  %311 = vperm.xlu1 %486, %v207_v13  }
  0x2f   : > { %302 = vperm.xlu2 %487, %v206_v14  }
  0x35   : > { %320 = vperm.xlu0 %485, %v208_v15  }
  0x71   : > { %v231_v20 = vpop.permute.xlu2 %230 }
  0x79   : > { %v249_v23 = vpop.permute.xlu2 %248 }
  0x81   : > { %v276_v26 = vpop.permute.xlu2 %275 }
  0x87   : > { %v214_v19 = vpop.permute.xlu0 %213  ;;  %v222_v21 = vpop.permute.xlu1 %221 }
  0x89   : > { %v303_v29 = vpop.permute.xlu2 %302 }
  0x8f   : > { %v240_v22 = vpop.permute.xlu0 %239  ;;  %v258_v24 = vpop.permute.xlu1 %257 }
  0x96   : > { %v193_v16 = vpop.f32.mrf.mxu0 }
  0x97   : > { %235 = vrot.lane.b32.xlu2 %v193_v16, %s553_s17  ;;  %226 = vrot.lane.b32.xlu1 %v193_v16, %s554_s19  ;;  %v267_v25 = vpop.permute.xlu0 %266  ;;  %v285_v27 = vpop.permute.xlu1 %284  ;;  %v216_v35 = vmul.f32 %v214_v19, %v193_v16  ;;  %s159_s17 = sand.u32 1, %s542_s13  }
  0x98   : > { %217 = vrot.lane.b32.xlu0 %v193_v16, %s555_s20  ;;  %s423_s19 = sshll.u32 %s159_s17, 3  ;;  %s428_s20 = sshll.u32 %s608_s16, 3 }
  0x99   : > { %s345_s16 = scalar_lea.sflag [#allocation3], %s159_s17 }
  0x9f   : > { %262 = vrot.lane.b32.xlu2 %v193_v16, %s556_s24  ;;  %244 = vrot.lane.b32.xlu1 %v193_v16, %s557_s25  ;;  %v294_v28 = vpop.permute.xlu0 %293  ;;  %v312_v30 = vpop.permute.xlu1 %311 }
  0xa0   : > { %253 = vrot.lane.b32.xlu0 %v193_v16, %s558_s26  ;;  %s355_s26 = scalar_lea.hbm %s723_s3, %s428_s20 }
  0xa7   : > { %289 = vrot.lane.b32.xlu2 %v193_v16, %s559_s27  ;;  %271 = vrot.lane.b32.xlu1 %v193_v16, %s560_s28  ;;  %v321_v31 = vpop.permute.xlu0 %320  ;;  %s161_s27 = scalar_lea.vmem [#allocation2], %s423_s19 }
  0xa8   : > { %280 = vrot.lane.b32.xlu0 %v193_v16, %s561_s29  ;;  %s357_s28 = sshll.u32 %s161_s27, 4  ;;  %s359_s29 = sshll.u32 %s355_s26, 4  ;;  %s358_s28 = int_to_ptr.vmem [resolvable:$true] %s357_s28  ;;  %s360_s29 = int_to_ptr.hbm [resolvable:$true] %s359_s29 }
  0xaf   : > { %316 = vrot.lane.b32.xlu2 %v193_v16, %s562_s30  ;;  %298 = vrot.lane.b32.xlu1 %v193_v16, %s563_s4  ;;  %s502_s30 = sshra.s32 %s360_s29, 4  ;;  %s503_s30 = int_to_ptr.hbm [resolvable:$true] %s502_s30 }
  0xb0   : > { %307 = vrot.lane.b32.xlu0 %v193_v16, %s564_s5  ;;  %s504_s4 = scalar_lea.hbm %s503_s30, 8  ;;  %p509_p0 = scmp.lt.s32.totalorder %s503_s30, %s723_s3 }
  0xb1   : > { %p505_p11 = scmp.ne.s32.totalorder %s503_s30, %s504_s4  ;;  %p510_p1 = scmp.lt.s32.totalorder %s508_s7, %s504_s4 }
  0xb3   : > { %p506_p12 = pnand %p505_p11, %p625_p5  ;;  %p511_p2 = por %p510_p1, %p509_p0 }
  0xb5   : > { %p507_p13 = pneg %p506_p12 }
  0xb7   : > { %329 = vperm.xlu2 %487, %v209_v17   ;;  %325 = vrot.lane.b32.xlu1 %v193_v16, %s565_s8  ;;  %p512_p3 = pnand %p511_p2, %p507_p13 }
  0xb8   : > { %334 = vrot.lane.b32.xlu0 %v193_v16, %s566_s9 }
  0xbf   : > { %338 = vperm.xlu1 %486, %v210_v18  }
  0xf1   : > { %v236_v32 = vpop.permute.xlu2 %235 }
  0xf2   : > { %v242_v41 = vmul.f32 %v240_v22, %v236_v32 }
  0xf9   : > { %v263_v39 = vpop.permute.xlu2 %262 }
  0xfa   : > { %v269_v51 = vmul.f32 %v267_v25, %v263_v39 }
 0x101   : > { %v290_v49 = vpop.permute.xlu2 %289 }
 0x102   : > { %v296_v60 = vmul.f32 %v294_v28, %v290_v49 }
 0x109   : > { %v227_v33 = vpop.permute.xlu1 %226  ;;  %v317_v59 = vpop.permute.xlu2 %316 }
 0x10a   : > { %v218_v34 = vpop.permute.xlu0 %217  ;;  %v233_v37 = vmul.f32 %v231_v20, %v227_v33  ;;  %v323_v5 = vmul.f32 %v321_v31, %v317_v59 }
 0x10b   : > { %v224_v36 = vmul.f32 %v222_v21, %v218_v34 }
 0x10d   : > { %v225_v38 = vadd.f32 %v224_v36, %v216_v35 }
 0x10f   : > { %v234_v40 = vadd.f32 %v233_v37, %v225_v38 }
 0x111   : > { %v245_v42 = vpop.permute.xlu1 %244  ;;  %v243_v43 = vadd.f32 %v242_v41, %v234_v40  ;;  %v330_v4 = vpop.permute.xlu2 %329 }
 0x112   : > { %v251_v44 = vmul.f32 %v249_v23, %v245_v42  ;;  %v254_v45 = vpop.permute.xlu0 %253 }
 0x113   : > { %v260_v47 = vmul.f32 %v258_v24, %v254_v45 }
 0x114   : > { %v252_v46 = vadd.f32 %v251_v44, %v243_v43 }
 0x116   : > { %v261_v48 = vadd.f32 %v260_v47, %v252_v46 }
 0x118   : > { %v270_v53 = vadd.f32 %v269_v51, %v261_v48 }
 0x119   : > { %v272_v50 = vpop.permute.xlu1 %271 }
 0x11a   : > { %v278_v52 = vmul.f32 %v276_v26, %v272_v50  ;;  %v281_v54 = vpop.permute.xlu0 %280 }
 0x11b   : > { %v287_v56 = vmul.f32 %v285_v27, %v281_v54 }
 0x11c   : > { %v279_v55 = vadd.f32 %v278_v52, %v270_v53 }
 0x11e   : > { %v288_v58 = vadd.f32 %v287_v56, %v279_v55 }
 0x120   : > { %v297_v62 = vadd.f32 %v296_v60, %v288_v58 }
 0x121   : > { %v299_v57 = vpop.permute.xlu1 %298 }
 0x122   : > { %v305_v61 = vmul.f32 %v303_v29, %v299_v57  ;;  %v308_v63 = vpop.permute.xlu0 %307 }
 0x123   : > { %v314_v2 = vmul.f32 %v312_v30, %v308_v63 }
 0x124   : > { %v306_v0 = vadd.f32 %v305_v61, %v297_v62 }
 0x126   : > { %v315_v3 = vadd.f32 %v314_v2, %v306_v0 }
 0x128   : > { %v324_v7 = vadd.f32 %v323_v5, %v315_v3 }
 0x129   : > { %v326_v1 = vpop.permute.xlu1 %325 }
 0x12a   : > { %v332_v6 = vmul.f32 %v330_v4, %v326_v1  ;;  %v335_v8 = vpop.permute.xlu0 %334 }
 0x12c   : > { %v333_v10 = vadd.f32 %v332_v6, %v324_v7 }
 0x131   : > { %v339_v9 = vpop.permute.xlu1 %338 }
 0x132   : > { %v341_v11 = vmul.f32 %v339_v9, %v335_v8 }
 0x134   : > { %v342_v12 = vadd.f32 %v341_v11, %v333_v10 }
 0x136   : > { %343 = vst [vmem:[%s161_s27] sm:$0xff] %v342_v12 }
 0x137   : > { %515 = shalt.err (!%p512_p3)
}
 0x138   : > { %431 = dma.vmem_to_hbm [thread:$0]  (%p625_p5), %s358_s28, 128, %s360_s29, %s345_s16  }
 0x139 PF: > { %p437_p4 = scmp.ge.s32.totalorder %s550_s15, 2  ;;  %s371_s10 = sand.u32 1, %s538_s12  }
 0x13a   : > { %s372_s11 = scalar_lea.sflag [#allocation3], %s371_s10 }
 0x13b   : > { %p434_p7 = pnand %p437_p4, %p629_p6 }
 0x13d   : > { %p435_p8 = pneg %p434_p7 }
 0x13f   : > { %533 = dma.done.wait (%p435_p8), %s372_s11, 128  }
 0x140   : > { %535 = vsyncadd (%p435_p8), %s372_s11, 4294967168  ;;  %p13_p9 = scmp.ge.s32.totalorder %s612_s18, 4   ;;  %s726_s12 = smov %s542_s13 }
 0x141   : > { %s727_s13 = smov %s546_s14  ;;  %s728_s14 = smov %s623_s21 }
 0x142   : > { %s729_s15 = smov %s612_s18  ;;  %15 = sbr.rel (!%p13_p9) target bundleno = 3 (0x3), region = 67 }
 0x147   :  { %378 = vsyncpa [#allocation3], 1 }
 0x148   :  { %380 = vsyncpa [#allocation3 + $0x1], 1 }

</bundles_post_ra>
